<compile_context>
chip_gen: v7x
topology: tpu7x:2x2x1
jax: 0.10.0
libtpu: 0.0.40
codegen_flags: <defaults>
</compile_context>

<pallas_src>
import jax
import jax.numpy as jnp
from jax.experimental import pallas as pl
from jax.experimental.pallas import tpu as pltpu

# ------------------------- model dimensions (small) -------------------------
B = 16            # batch
FRAME = 128       # samples per frame (synthetic "conv encoder" stride/kernel)
T = 16            # time frames
L = T * FRAME     # waveform length (after channel squeeze) = 2048
SSL_OUT_DIM = 256 # D: ssl_out_dim
BM = B            # batch tile per grid step -> single grid step at this size


# ------------------------------- Pallas kernel ------------------------------
def mos_kernel(wav_ref, w_ssl_ref, b_ssl_ref, w_out_ref, b_out_ref, o_ref):
    """Fused forward: time-mean -> ssl frame projection -> output linear.

    wav_ref:   (BM, T, F) f32  VMEM   framed waveform batch tile
    w_ssl_ref: (F, D)     f32  VMEM   synthetic ssl_model frame projection
    b_ssl_ref: (1, D)     f32  VMEM
    w_out_ref: (1, D)     f32  VMEM   nn.Linear(D, 1) weight, torch (1, D) layout
    b_out_ref: (1, 1)     f32  SMEM   nn.Linear(D, 1) bias (scalar)
    o_ref:     (BM, 1)    f32  VMEM
    """
    bm, t, f = wav_ref.shape
    inv_t = 1.0 / t

    # --- torch.mean(x, 1) hoisted before the (linear) frame projection ------
    # Exact because the synthetic ssl stand-in is a per-frame linear map.
    wav_mean = jnp.sum(wav_ref[...], axis=1) * inv_t                 # (BM, F)

    # --- synthetic ssl_model: linear projection of the time-averaged frame --
    x_mean = jnp.dot(wav_mean, w_ssl_ref[...],
                     preferred_element_type=jnp.float32)             # (BM, D)
    x_mean = x_mean + b_ssl_ref[...]        # bias after the mean (equivalent)

    # --- self.output_layer(x): Linear(D, 1) via VPU mul + lane reduction ----
    out = jnp.sum(x_mean * w_out_ref[...], axis=-1, keepdims=True)   # (BM, 1)
    o_ref[...] = out + b_out_ref[0, 0]


# --------------------------------- wrapper ----------------------------------
def mos_predictor_forward(wav, params):
    """wav: (B, 1, L) float32 -> (B,) float32, matching MosPredictor.forward."""
    bsz, _, length = wav.shape
    assert length % FRAME == 0 and bsz % BM == 0
    t = length // FRAME

    wav = wav.reshape(bsz, length)              # wav.squeeze(1)
    wav_frames = wav.reshape(bsz, t, FRAME)     # framing for synthetic encoder

    d = params["w_ssl"].shape[1]
    grid = (bsz // BM,)                         # (1,) at this size

    out = pl.pallas_call(
        mos_kernel,
        out_shape=jax.ShapeDtypeStruct((bsz, 1), jnp.float32),
        grid=grid,
        in_specs=[
            # batch tile of waveform frames
            pl.BlockSpec((BM, t, FRAME), lambda i: (i, 0, 0)),
            # weights / vector bias: constant block index -> VMEM-resident
            pl.BlockSpec((FRAME, d), lambda i: (0, 0)),
            pl.BlockSpec((1, d), lambda i: (0, 0)),
            pl.BlockSpec((1, d), lambda i: (0, 0)),
            # scalar bias lives in SMEM (no padded VMEM tile, no per-step DMA)
            pl.BlockSpec(memory_space=pltpu.MemorySpace.SMEM),
        ],
        out_specs=pl.BlockSpec((BM, 1), lambda i: (i, 0)),
        compiler_params=pltpu.CompilerParams(
            dimension_semantics=("arbitrary",)),
    )(wav_frames, params["w_ssl"], params["b_ssl"],
      params["w_out"], params["b_out"])

    return out[:, 0]                            # x.squeeze(1)


# ------------------------------ reference (JAX) ------------------------------
def mos_predictor_ref(wav, params):
    """Straight port of the torch order: project -> mean -> linear."""
    bsz, _, length = wav.shape
    wav = wav.reshape(bsz, length)
    x = wav.reshape(bsz, length // FRAME, FRAME) @ params["w_ssl"] + params["b_ssl"]
    x = jnp.mean(x, axis=1)                                   # (B, D)
    x = x @ params["w_out"].T + params["b_out"]               # (B, 1)
    return x[:, 0]


# ----------------------------------- main ------------------------------------
if __name__ == "__main__":
    key = jax.random.PRNGKey(0)
    k_wav, k_wssl, k_bssl, k_wout, k_bout = jax.random.split(key, 5)

    # Deterministic synthetic parameters (shapes implied by the module).
    params = {
        "w_ssl": jax.random.normal(k_wssl, (FRAME, SSL_OUT_DIM), jnp.float32) * 0.1,
        "b_ssl": jax.random.normal(k_bssl, (1, SSL_OUT_DIM), jnp.float32) * 0.01,
        # nn.Linear(ssl_features, 1): torch weight layout (1, D), bias (1, 1).
        "w_out": jax.random.normal(k_wout, (1, SSL_OUT_DIM), jnp.float32) * 0.1,
        "b_out": jax.random.normal(k_bout, (1, 1), jnp.float32) * 0.01,
    }

    # Input waveform: (B, 1, L), matching the PyTorch NCL convention pre-squeeze.
    wav = jax.random.normal(k_wav, (B, 1, L), jnp.float32)

    out = mos_predictor_forward(wav, params)
    out = jax.block_until_ready(out)

    ref = mos_predictor_ref(wav, params)
    assert out.shape == (B,), out.shape
    assert jnp.allclose(out, ref, atol=1e-4, rtol=1e-4), (out, ref)

    print("KERNEL_OK")
</pallas_src>

<mosaic_0001>
module attributes {stable_mosaic.version = 11 : i64} {
  func.func @mos_kernel(%arg0: i32, %arg1: memref<16x16x128xf32, #tpu.memory_space<vmem>>, %arg2: memref<128x256xf32, #tpu.memory_space<vmem>>, %arg3: memref<1x256xf32, #tpu.memory_space<vmem>>, %arg4: memref<1x256xf32, #tpu.memory_space<vmem>>, %arg5: memref<1x1xf32, #tpu.memory_space<smem>>, %arg6: memref<16x1xf32, #tpu.memory_space<vmem>>) attributes {dimension_semantics = [#tpu.dimension_semantics<arbitrary>], iteration_bounds = array<i64: 1>, scalar_prefetch = 0 : i64, scratch_operands = 0 : i64, tpu.core_type = #tpu.core_type<tc>, window_params = [{transform_indices = @transform_0, window_bounds = array<i64: 16, 16, 128>}, {pipeline_mode = #tpu.pipeline_mode<synchronous>, transform_indices = @transform_1, window_bounds = array<i64: 128, 256>}, {pipeline_mode = #tpu.pipeline_mode<synchronous>, transform_indices = @transform_2, window_bounds = array<i64: 1, 256>}, {pipeline_mode = #tpu.pipeline_mode<synchronous>, transform_indices = @transform_3, window_bounds = array<i64: 1, 256>}, {transform_indices = @transform_4, window_bounds = array<i64: 1, 1>}, {transform_indices = @transform_5, window_bounds = array<i64: 16, 1>}]} {
    %c0 = arith.constant 0 : index
    %c0_0 = arith.constant 0 : index
    %c0_1 = arith.constant 0 : index
    %0 = vector.load %arg1[%c0, %c0_0, %c0_1] : memref<16x16x128xf32, #tpu.memory_space<vmem>>, vector<16x16x128xf32>
    %cst = arith.constant dense<0.000000e+00> : vector<16x128xf32>
    %1 = vector.multi_reduction <add>, %0, %cst [1] : vector<16x16x128xf32> to vector<16x128xf32>
    %cst_2 = arith.constant 6.250000e-02 : f32
    %2 = vector.broadcast %cst_2 : f32 to vector<16x128xf32>
    %3 = arith.mulf %1, %2 : vector<16x128xf32>
    %c0_3 = arith.constant 0 : index
    %c0_4 = arith.constant 0 : index
    %4 = vector.load %arg2[%c0_3, %c0_4] : memref<128x256xf32, #tpu.memory_space<vmem>>, vector<128x256xf32>
    %cst_5 = arith.constant dense<0.000000e+00> : vector<16x256xf32>
    %5 = tpu.matmul %3, %4, %cst_5 {dimension_numbers = #tpu.dot_dimension_numbers<[1], [0], [0], [1], [0, 0, 1, 1], [], []>} : vector<16x128xf32>, vector<128x256xf32>, vector<16x256xf32> -> vector<16x256xf32>
    %c0_6 = arith.constant 0 : index
    %c0_7 = arith.constant 0 : index
    %6 = vector.load %arg3[%c0_6, %c0_7] : memref<1x256xf32, #tpu.memory_space<vmem>>, vector<1x256xf32>
    %7 = vector.broadcast %6 : vector<1x256xf32> to vector<16x256xf32>
    %8 = arith.addf %5, %7 : vector<16x256xf32>
    %c0_8 = arith.constant 0 : index
    %c0_9 = arith.constant 0 : index
    %9 = vector.load %arg4[%c0_8, %c0_9] : memref<1x256xf32, #tpu.memory_space<vmem>>, vector<1x256xf32>
    %10 = vector.broadcast %9 : vector<1x256xf32> to vector<16x256xf32>
    %11 = arith.mulf %8, %10 : vector<16x256xf32>
    %cst_10 = arith.constant dense<0.000000e+00> : vector<16xf32>
    %12 = vector.multi_reduction <add>, %11, %cst_10 [1] : vector<16x256xf32> to vector<16xf32>
    %13 = vector.shape_cast %12 : vector<16xf32> to vector<16x1xf32>
    %c0_11 = arith.constant 0 : index
    %c0_12 = arith.constant 0 : index
    %14 = memref.load %arg5[%c0_11, %c0_12] : memref<1x1xf32, #tpu.memory_space<smem>>
    %15 = vector.broadcast %14 : f32 to vector<16x1xf32>
    %16 = arith.addf %13, %15 : vector<16x1xf32>
    %c0_13 = arith.constant 0 : index
    %c0_14 = arith.constant 0 : index
    %17 = vector.load %arg6[%c0_13, %c0_14] : memref<16x1xf32, #tpu.memory_space<vmem>>, vector<16x1xf32>
    tpu.vector_store %arg6[%c0_13, %c0_14], %16 {strides = array<i32>} : memref<16x1xf32, #tpu.memory_space<vmem>>, vector<16x1xf32>,
    return
  }
  func.func @transform_0(%arg0: i32) -> (i32, i32, i32) {
    %c0_i32 = arith.constant 0 : i32
    %c0_i32_0 = arith.constant 0 : i32
    %c0_i32_1 = arith.constant 0 : i32
    return %arg0, %c0_i32, %c0_i32_0 : i32, i32, i32
  }
  func.func @transform_1(%arg0: i32) -> (i32, i32) {
    %c0_i32 = arith.constant 0 : i32
    %c0_i32_0 = arith.constant 0 : i32
    %c0_i32_1 = arith.constant 0 : i32
    return %c0_i32, %c0_i32_0 : i32, i32
  }
  func.func @transform_2(%arg0: i32) -> (i32, i32) {
    %c0_i32 = arith.constant 0 : i32
    %c0_i32_0 = arith.constant 0 : i32
    %c0_i32_1 = arith.constant 0 : i32
    return %c0_i32, %c0_i32_0 : i32, i32
  }
  func.func @transform_3(%arg0: i32) -> (i32, i32) {
    %c0_i32 = arith.constant 0 : i32
    %c0_i32_0 = arith.constant 0 : i32
    %c0_i32_1 = arith.constant 0 : i32
    return %c0_i32, %c0_i32_0 : i32, i32
  }
  func.func @transform_4(%arg0: i32) -> (i32, i32) {
    %c0_i32 = arith.constant 0 : i32
    %c0_i32_0 = arith.constant 0 : i32
    %c0_i32_1 = arith.constant 0 : i32
    return %c0_i32, %c0_i32_0 : i32, i32
  }
  func.func @transform_5(%arg0: i32) -> (i32, i32) {
    %c0_i32 = arith.constant 0 : i32
    %c0_i32_0 = arith.constant 0 : i32
    return %arg0, %c0_i32 : i32, i32
  }
}

</mosaic_0001>

<bundles_post_ra>
// kernel: tpu_custom_call.1
= control target key start
LH: loop header
LB: loop body
LE: loop exit
PB: predicated region body
PF: predicated region fallthrough
CT: control target
= control target key end

     0   :  { %11 = vsyncpa [#allocation4], 0  ;;  %s621_s0 = inlined_call_operand.hbm [shape: f32[16,16,128], index: 0, kind: input, shape index: {}]   ;;  %s622_s1 = inlined_call_operand.hbm [shape: f32[128,256], index: 1, kind: input, shape index: {}]   ;;  %s623_s2 = inlined_call_operand.vmem [shape: f32[1,256], index: 2, kind: input, shape index: {}]   ;;  %s624_s3 = inlined_call_operand.vmem [shape: f32[1,256], index: 3, kind: input, shape index: {}]   ;;  %s625_s4 = inlined_call_operand.<no memory space> [shape: f32[1,1], index: 4, kind: input, shape index: {}]   ;;  %s626_s5 = inlined_call_operand.vmem [shape: f32[16,1], index: 5, kind: output, shape index: {}]  }
   0x1   :  { %12 = vsyncpa [#allocation6], 0  ;;  %s507_s18 = smov [#allocation3]   ;;  %s459_s22 = scalar_lea.hbm %s621_s0, 4096 }
   0x2   :  { %s18_s19 = sshll.u32 %s507_s18, 4  ;;  %p460_p0 = scmp.ne.s32.totalorder %s621_s0, %s459_s22  ;;  %s19_s19 = int_to_ptr.vmem [resolvable:$true] %s18_s19 }
   0x3   :  { %p463_p1 = scmp.lt.u32.totalorder %s459_s22, %s621_s0 }
   0x5   :  { %p465_p2 = pnand %p463_p1, %p460_p0 }
   0x7   :  { %468 = shalt.err (!%p465_p2)
}
   0x8   :  { %s469_s27 = scalar_lea.vmem %s19_s19, 4096  ;;  %p474_p4 = scmp.lt.s32.totalorder %s19_s19, %s19_s19 }
   0x9   :  { %p470_p3 = scmp.ne.s32.totalorder %s19_s19, %s469_s27  ;;  %p475_p5 = scmp.lt.s32.totalorder %s469_s27, %s469_s27 }
   0xb   :  { %p476_p6 = por %p475_p5, %p474_p4 }
   0xd   :  { %p477_p7 = pnand %p476_p6, %p470_p3 }
   0xf   :  { %480 = shalt.err (!%p477_p7)
}
  0x10   :  { %s508_s28 = smov 128   ;;  %s509_s29 = smov 8  }
  0x11   :  { %24 = dma.hbm_to_vmem [thread:$0]  %s621_s0, 4096, %s19_s19, [#allocation4], %s508_s28, %s508_s28, %s509_s29  }
  0x12   :  { %s510_s7 = smov [#allocation5]   ;;  %s481_s11 = scalar_lea.hbm %s622_s1, 4096 }
  0x13   :  { %s30_s8 = sshll.u32 %s510_s7, 4  ;;  %p482_p8 = scmp.ne.s32.totalorder %s622_s1, %s481_s11  ;;  %s31_s8 = int_to_ptr.vmem [resolvable:$true] %s30_s8 }
  0x14   :  { %p485_p9 = scmp.lt.u32.totalorder %s481_s11, %s622_s1 }
  0x16   :  { %p487_p10 = pnand %p485_p9, %p482_p8 }
  0x18   :  { %490 = shalt.err (!%p487_p10)
}
  0x19   :  { %s491_s16 = scalar_lea.vmem %s31_s8, 4096  ;;  %p496_p12 = scmp.lt.s32.totalorder %s31_s8, %s31_s8 }
  0x1a   :  { %p492_p11 = scmp.ne.s32.totalorder %s31_s8, %s491_s16  ;;  %p497_p13 = scmp.lt.s32.totalorder %s491_s16, %s491_s16 }
  0x1c   :  { %p498_p0 = por %p497_p13, %p496_p12 }
  0x1e   :  { %p499_p1 = pnand %p498_p0, %p492_p11 }
  0x20   :  { %502 = shalt.err (!%p499_p1)
}
  0x21   :  { %s511_s0 = smov 256   ;;  %s512_s17 = smov 16  }
  0x22   :  { %36 = dma.hbm_to_vmem [thread:$0]  %s622_s1, 4096, %s31_s8, [#allocation6], %s511_s0, %s511_s0, %s512_s17  }
  0x23   :  { %503 = dma.done.wait [#allocation4], 4096  }
  0x24   :  { %504 = vsyncadd [#allocation4], 4294963200 }
  0x25   :  { %505 = dma.done.wait [#allocation6], 4096  }
  0x26   :  { %506 = vsyncadd [#allocation6], 4294963200  ;;  %v513_v0 = vmov 0.0   ;;  %v210_v1 = vld [vmem:[#allocation5 + $0x8] sm:$0xff]  ;;  %v212_v2 = vld [vmem:[#allocation5 + $0x18] sm:$0xff]  ;;  %vm269_vm0 = vcmask 1041409  }
  0x27   :  { %356 = vmatprep.mubr.f32.mxu0 %v513_v0  ;;  %362 = vmatprep.mubr.f32.mxu1 %v513_v0  ;;  %v209_v3 = vld [vmem:[#allocation5] sm:$0xff]  ;;  %v404_v4 = vpack.c.bf16 %v212_v2, %v210_v1  ;;  %v211_v5 = vld [vmem:[#allocation5 + $0x10] sm:$0xff]  ;;  %v214_v6 = vld [vmem:[#allocation5 + $0x28] sm:$0xff]  ;;  %vm271_vm1 = vcmask 1042434   ;;  %vm273_vm2 = vcmask 1043459   ;;  %vm275_vm3 = vcmask 1044484  }
  0x28   :  { %v216_v7 = vld [vmem:[#allocation5 + $0x38] sm:$0xff]  ;;  %v406_v8 = vpack.c.bf16 %v211_v5, %v209_v3  ;;  %v213_v10 = vld [vmem:[#allocation5 + $0x20] sm:$0xff]  ;;  %v215_v11 = vld [vmem:[#allocation5 + $0x30] sm:$0xff]  ;;  %vm277_vm4 = vcmask 1045509   ;;  %vm279_vm5 = vcmask 1046534   ;;  %vm281_vm6 = vcmask 1047559  }
  0x29   :  { %v408_v9 = vpack.c.bf16 %v216_v7, %v214_v6  ;;  %v218_v12 = vld [vmem:[#allocation5 + $0x48] sm:$0xff]  ;;  %405 = vmatprep.subr.bf16.mxu0 %v404_v4  ;;  %436 = vmatprep.subr.bf16.mxu1 %v404_v4  ;;  %v220_v13 = vld [vmem:[#allocation5 + $0x58] sm:$0xff]  ;;  %v410_v14 = vpack.c.bf16 %v215_v11, %v213_v10  ;;  %v217_v15 = vld [vmem:[#allocation5 + $0x40] sm:$0xff]  ;;  %vm395_vm7 = vcmask 7168  }
  0x2a   :  { %407 = vmatpush1.bf16.msra.mxu0 %v406_v8  ;;  %444 = vmatpush1.bf16.msra.mxu1 %v406_v8  ;;  %v412_v16 = vpack.c.bf16 %v220_v13, %v218_v12  ;;  %v219_v17 = vld [vmem:[#allocation5 + $0x50] sm:$0xff]  ;;  %v222_v18 = vld [vmem:[#allocation5 + $0x68] sm:$0xff]  ;;  %v224_v19 = vld [vmem:[#allocation5 + $0x78] sm:$0xff] }
  0x2b   :  { %409 = vmatprep.subr.bf16.mxu0 %v408_v9  ;;  %437 = vmatprep.subr.bf16.mxu1 %v408_v9  ;;  %v221_v20 = vld [vmem:[#allocation5 + $0x60] sm:$0xff]  ;;  %v223_v21 = vld [vmem:[#allocation5 + $0x70] sm:$0xff]  ;;  %v226_v22 = vld [vmem:[#allocation5 + $0x88] sm:$0xff]  ;;  %v414_v28 = vpack.c.bf16 %v219_v17, %v217_v15  ;;  %v416_v32 = vpack.c.bf16 %v224_v19, %v222_v18 }
  0x2c   :  { %v228_v23 = vld [vmem:[#allocation5 + $0x98] sm:$0xff]  ;;  %v225_v24 = vld [vmem:[#allocation5 + $0x80] sm:$0xff]  ;;  %v227_v25 = vld [vmem:[#allocation5 + $0x90] sm:$0xff]  ;;  %v418_v41 = vpack.c.bf16 %v223_v21, %v221_v20 }
  0x2d   :  { %v230_v26 = vld [vmem:[#allocation5 + $0xa8] sm:$0xff]  ;;  %v232_v27 = vld [vmem:[#allocation5 + $0xb8] sm:$0xff]  ;;  %v229_v29 = vld [vmem:[#allocation5 + $0xa0] sm:$0xff]  ;;  %v420_v42 = vpack.c.bf16 %v228_v23, %v226_v22  ;;  %v422_v43 = vpack.c.bf16 %v227_v25, %v225_v24 }
  0x2e   :  { %411 = vmatpush1.bf16.msra.mxu0 %v410_v14  ;;  %445 = vmatpush1.bf16.msra.mxu1 %v410_v14  ;;  %v231_v30 = vld [vmem:[#allocation5 + $0xb0] sm:$0xff]  ;;  %v234_v31 = vld [vmem:[#allocation5 + $0xc8] sm:$0xff]  ;;  %v236_v33 = vld [vmem:[#allocation5 + $0xd8] sm:$0xff]  ;;  %v568_v44 = vpack.c.bf16 %v232_v27, %v230_v26 }
  0x2f   :  { %413 = vmatprep.subr.bf16.mxu0 %v412_v16  ;;  %438 = vmatprep.subr.bf16.mxu1 %v412_v16  ;;  %v233_v34 = vld [vmem:[#allocation5 + $0xc0] sm:$0xff]  ;;  %v235_v35 = vld [vmem:[#allocation5 + $0xd0] sm:$0xff]  ;;  %v238_v36 = vld [vmem:[#allocation5 + $0xe8] sm:$0xff]  ;;  %v570_v48 = vpack.c.bf16 %v231_v30, %v229_v29  ;;  %v572_v54 = vpack.c.bf16 %v236_v33, %v234_v31 }
  0x30   :  { %v240_v37 = vld [vmem:[#allocation5 + $0xf8] sm:$0xff]  ;;  %v237_v38 = vld [vmem:[#allocation5 + $0xe0] sm:$0xff]  ;;  %v239_v39 = vld [vmem:[#allocation5 + $0xf0] sm:$0xff]  ;;  %v574_v55 = vpack.c.bf16 %v235_v35, %v233_v34 }
  0x31   :  { %v49_v40 = vld [vmem:[#allocation3] sm:$0xff]  ;;  %v50_v45 = vld [vmem:[#allocation3 + $0x8] sm:$0xff]  ;;  %v51_v46 = vld [vmem:[#allocation3 + $0x10] sm:$0xff]  ;;  %v576_v3 = vpack.c.bf16 %v240_v37, %v238_v36  ;;  %v578_v4 = vpack.c.bf16 %v239_v39, %v237_v38 }
  0x32   :  { %v52_v47 = vld [vmem:[#allocation3 + $0x18] sm:$0xff]  ;;  %415 = vmatpush1.bf16.msra.mxu0 %v414_v28  ;;  %446 = vmatpush1.bf16.msra.mxu1 %v414_v28  ;;  %v53_v49 = vld [vmem:[#allocation3 + $0x20] sm:$0xff]  ;;  %v54_v50 = vld [vmem:[#allocation3 + $0x28] sm:$0xff]  ;;  %v81_v52 = vadd.f32 %v50_v45, %v49_v40 }
  0x33   :  { %v55_v51 = vld [vmem:[#allocation3 + $0x30] sm:$0xff]  ;;  %v88_v53 = vadd.f32 %v52_v47, %v51_v46  ;;  %417 = vmatprep.subr.bf16.mxu0 %v416_v32  ;;  %439 = vmatprep.subr.bf16.mxu1 %v416_v32  ;;  %v56_v56 = vld [vmem:[#allocation3 + $0x38] sm:$0xff]  ;;  %v57_v57 = vld [vmem:[#allocation3 + $0x40] sm:$0xff]  ;;  %v95_v59 = vadd.f32 %v54_v50, %v53_v49 }
  0x34   :  { %v58_v58 = vld [vmem:[#allocation3 + $0x48] sm:$0xff]  ;;  %v59_v60 = vld [vmem:[#allocation3 + $0x50] sm:$0xff]  ;;  %v60_v61 = vld [vmem:[#allocation3 + $0x58] sm:$0xff]  ;;  %v82_v63 = vrot.slane %v81_v52, 4  ;;  %v102_v1 = vadd.f32 %v56_v56, %v55_v51 }
  0x35   :  { %v61_v62 = vld [vmem:[#allocation3 + $0x60] sm:$0xff]  ;;  %v89_v0 = vrot.slane %v88_v53, 4  ;;  %v109_v2 = vadd.f32 %v58_v58, %v57_v57  ;;  %v62_v5 = vld [vmem:[#allocation3 + $0x68] sm:$0xff]  ;;  %v63_v6 = vld [vmem:[#allocation3 + $0x70] sm:$0xff]  ;;  %v96_v8 = vrot.slane %v95_v59, 4  ;;  %v116_v9 = vadd.f32 %v60_v61, %v59_v60 }
  0x36   :  { %v64_v7 = vld [vmem:[#allocation3 + $0x78] sm:$0xff]  ;;  %419 = vmatpush1.bf16.msra.mxu0 %v418_v41  ;;  %447 = vmatpush1.bf16.msra.mxu1 %v418_v41  ;;  %v83_v10 = vadd.f32 %v82_v63, %v81_v52  ;;  %v103_v12 = vrot.slane %v102_v1, 4  ;;  %v123_v16 = vadd.f32 %v62_v5, %v61_v62  ;;  %v65_v51 = vld [vmem:[#allocation3 + $0x80] sm:$0xff]  ;;  %v66_v52 = vld [vmem:[#allocation3 + $0x88] sm:$0xff] }
  0x37   :  { %v90_v11 = vadd.f32 %v89_v0, %v88_v53  ;;  %v110_v13 = vrot.slane %v109_v2, 4  ;;  %421 = vmatprep.subr.bf16.mxu0 %v420_v42  ;;  %440 = vmatprep.subr.bf16.mxu1 %v420_v42  ;;  %v97_v14 = vadd.f32 %v96_v8, %v95_v59  ;;  %v117_v15 = vrot.slane %v116_v9, 4  ;;  %v67_v59 = vld [vmem:[#allocation3 + $0x90] sm:$0xff]  ;;  %v68_v63 = vld [vmem:[#allocation3 + $0x98] sm:$0xff]  ;;  %v69_v0 = vld [vmem:[#allocation3 + $0xa0] sm:$0xff] }
  0x38   :  { %v130_v17 = vadd.f32 %v64_v7, %v63_v6  ;;  %v84_v18 = vrot.slane %v83_v10, 2  ;;  %v104_v20 = vadd.f32 %v103_v12, %v102_v1  ;;  %v124_v24 = vrot.slane %v123_v16, 4  ;;  %v70_v1 = vld [vmem:[#allocation3 + $0xa8] sm:$0xff]  ;;  %v71_v6 = vld [vmem:[#allocation3 + $0xb0] sm:$0xff]  ;;  %v72_v7 = vld [vmem:[#allocation3 + $0xb8] sm:$0xff] }
  0x39   :  { %v91_v19 = vrot.slane %v90_v11, 2  ;;  %v111_v21 = vadd.f32 %v110_v13, %v109_v2  ;;  %v98_v22 = vrot.slane %v97_v14, 2  ;;  %v118_v23 = vadd.f32 %v117_v15, %v116_v9  ;;  %v73_v13 = vld [vmem:[#allocation3 + $0xc0] sm:$0xff]  ;;  %v75_v15 = vld [vmem:[#allocation3 + $0xd0] sm:$0xff] }
  0x3a   :  { %v131_v25 = vrot.slane %v130_v17, 4  ;;  %423 = vmatpush1.bf16.msra.mxu0 %v422_v43  ;;  %448 = vmatpush1.bf16.msra.mxu1 %v422_v43  ;;  %v85_v26 = vadd.f32 %v84_v18, %v83_v10  ;;  %v105_v28 = vrot.slane %v104_v20, 2  ;;  %v125_v32 = vadd.f32 %v124_v24, %v123_v16  ;;  %v76_v16 = vld [vmem:[#allocation3 + $0xd8] sm:$0xff]  ;;  %v77_v24 = vld [vmem:[#allocation3 + $0xe0] sm:$0xff] }
  0x3b   :  { %v92_v27 = vadd.f32 %v91_v19, %v90_v11  ;;  %v112_v29 = vrot.slane %v111_v21, 2  ;;  %425 = vmatprep.subr.bf16.mxu0 %v568_v44  ;;  %441 = vmatprep.subr.bf16.mxu1 %v568_v44  ;;  %v99_v30 = vadd.f32 %v98_v22, %v97_v14  ;;  %v119_v31 = vrot.slane %v118_v23, 2 }
  0x3c   :  { %v132_v33 = vadd.f32 %v131_v25, %v130_v17  ;;  %v86_v34 = vrot.slane %v85_v26, 1  ;;  %v106_v36 = vadd.f32 %v105_v28, %v104_v20  ;;  %v126_v40 = vrot.slane %v125_v32, 2  ;;  %v78_v25 = vld [vmem:[#allocation3 + $0xe8] sm:$0xff] }
  0x3d   :  { %v93_v35 = vrot.slane %v92_v27, 1  ;;  %v113_v37 = vadd.f32 %v112_v29, %v111_v21  ;;  %v100_v38 = vrot.slane %v99_v30, 1  ;;  %v120_v39 = vadd.f32 %v119_v31, %v118_v23  ;;  %v80_v31 = vld [vmem:[#allocation3 + $0xf8] sm:$0xff] }
  0x3e   :  { %v133_v41 = vrot.slane %v132_v33, 2  ;;  %427 = vmatpush1.bf16.msra.mxu0 %v570_v48  ;;  %449 = vmatpush1.bf16.msra.mxu1 %v570_v48  ;;  %v87_v42 = vadd.f32 %v86_v34, %v85_v26  ;;  %v107_v44 = vrot.slane %v106_v36, 1  ;;  %v127_v49 = vadd.f32 %v126_v40, %v125_v32 }
  0x3f   :  { %v94_v43 = vadd.f32 %v93_v35, %v92_v27  ;;  %v114_v45 = vrot.slane %v113_v37, 1  ;;  %429 = vmatprep.subr.bf16.mxu0 %v572_v54  ;;  %442 = vmatprep.subr.bf16.mxu1 %v572_v54  ;;  %v101_v46 = vadd.f32 %v100_v38, %v99_v30  ;;  %v121_v47 = vrot.slane %v120_v39, 1  ;;  %v79_v30 = vld [vmem:[#allocation3 + $0xf0] sm:$0xff] }
  0x40   :  { %v134_v50 = vadd.f32 %v133_v41, %v132_v33  ;;  %v108_v53 = vadd.f32 %v107_v44, %v106_v36  ;;  %v193_v57 = vmul.f32 0.0625, %v87_v42  ;;  %v128_v60 = vrot.slane %v127_v49, 1 }
  0x41   :  { %v115_v56 = vadd.f32 %v114_v45, %v113_v37  ;;  %v194_v58 = vmul.f32 0.0625, %v94_v43  ;;  %v122_v48 = vadd.f32 %v121_v47, %v120_v39  ;;  %v195_v62 = vmul.f32 0.0625, %v101_v46 }
  0x42   :  { %v135_v61 = vrot.slane %v134_v50, 1  ;;  %431 = vmatpush1.bf16.msra.mxu0 %v574_v55  ;;  %450 = vmatpush1.bf16.msra.mxu1 %v574_v55  ;;  %v196_v54 = vmul.f32 0.0625, %v108_v53  ;;  %v137_v8 = vadd.f32 %v66_v52, %v65_v51  ;;  %v129_v9 = vadd.f32 %v128_v60, %v127_v49  ;;  %v74_v55 = vld [vmem:[#allocation3 + $0xc8] sm:$0xff] }
  0x43   :  { %v197_v2 = vmul.f32 0.0625, %v115_v56  ;;  %v270_v5 = vsel %vm269_vm0, %v194_v58, %v193_v57  ;;  %433 = vmatprep.subr.bf16.mxu0 %v576_v3  ;;  %443 = vmatprep.subr.bf16.mxu1 %v576_v3  ;;  %v198_v11 = vmul.f32 0.0625, %v122_v48  ;;  %v144_v18 = vadd.f32 %v68_v63, %v67_v59 }
  0x44   :  { %v136_v10 = vadd.f32 %v135_v61, %v134_v50  ;;  %v272_v12 = vsel %vm271_vm1, %v195_v62, %v270_v5  ;;  %v138_v17 = vrot.slane %v137_v8, 4  ;;  %v151_v19 = vadd.f32 %v70_v1, %v69_v0 }
  0x45   :  { %v274_v14 = vsel %vm273_vm2, %v196_v54, %v272_v12  ;;  %v199_v20 = vmul.f32 0.0625, %v129_v9  ;;  %v158_v23 = vadd.f32 %v72_v7, %v71_v6  ;;  %v145_v27 = vrot.slane %v144_v18, 4 }
  0x46   :  { %v200_v21 = vmul.f32 0.0625, %v136_v10  ;;  %v276_v22 = vsel %vm275_vm3, %v197_v2, %v274_v14  ;;  %435 = vmatpush1.bf16.msra.mxu0 %v578_v4  ;;  %451 = vmatpush1.bf16.msra.mxu1 %v578_v4  ;;  %v139_v26 = vadd.f32 %v138_v17, %v137_v8  ;;  %v152_v28 = vrot.slane %v151_v19, 4 }
  0x47   :  { %v278_v3 = vsel %vm277_vm4, %v198_v11, %v276_v22  ;;  %v159_v32 = vrot.slane %v158_v23, 4  ;;  %v165_v33 = vadd.f32 %v74_v55, %v73_v13  ;;  %v172_v34 = vadd.f32 %v76_v16, %v75_v15 }
  0x48   :  { %v280_v29 = vsel %vm279_vm5, %v199_v20, %v278_v3  ;;  %v140_v36 = vrot.slane %v139_v26, 2  ;;  %v146_v37 = vadd.f32 %v145_v27, %v144_v18  ;;  %v153_v38 = vadd.f32 %v152_v28, %v151_v19 }
  0x49   :  { %v282_v35 = vsel %vm281_vm6, %v200_v21, %v280_v29  ;;  %v160_v4 = vadd.f32 %v159_v32, %v158_v23  ;;  %v166_v39 = vrot.slane %v165_v33, 4  ;;  %v173_v40 = vrot.slane %v172_v34, 4 }
  0x4a   :  { %357 = vmatmul.mubr.f32.vlgmr.msra.gmra.mrb[0].mxu0 %v282_v35  ;;  %v179_v41 = vadd.f32 %v78_v25, %v77_v24  ;;  %v141_v42 = vadd.f32 %v140_v36, %v139_v26  ;;  %v147_v43 = vrot.slane %v146_v37, 2  ;;  %v154_v44 = vrot.slane %v153_v38, 2  ;;  %v241_v35 = vld [vmem:[%s623_s2] sm:$0x3] }
  0x4b   :  { %v186_v45 = vadd.f32 %v80_v31, %v79_v30  ;;  %v161_v46 = vrot.slane %v160_v4, 2  ;;  %v167_v47 = vadd.f32 %v166_v39, %v165_v33  ;;  %v174_v49 = vadd.f32 %v173_v40, %v172_v34 }
  0x4c   :  { %v180_v50 = vrot.slane %v179_v41, 4  ;;  %v142_v51 = vrot.slane %v141_v42, 1  ;;  %v148_v52 = vadd.f32 %v147_v43, %v146_v37  ;;  %v155_v53 = vadd.f32 %v154_v44, %v153_v38  ;;  %v369_v37 = vld [vmem:[%s624_s3] sm:$0x3] }
  0x4d   :  { %v187_v56 = vrot.slane %v186_v45, 4  ;;  %v162_v57 = vadd.f32 %v161_v46, %v160_v4  ;;  %v168_v58 = vrot.slane %v167_v47, 2  ;;  %v175_v59 = vrot.slane %v174_v49, 2 }
  0x4e   :  { %v181_v48 = vadd.f32 %v180_v50, %v179_v41  ;;  %v143_v60 = vadd.f32 %v142_v51, %v141_v42  ;;  %v149_v61 = vrot.slane %v148_v52, 1  ;;  %v156_v62 = vrot.slane %v155_v53, 1 }
  0x4f   :  { %v188_v63 = vadd.f32 %v187_v56, %v186_v45  ;;  %v163_v0 = vrot.slane %v162_v57, 1  ;;  %v169_v1 = vadd.f32 %v168_v58, %v167_v47  ;;  %v176_v54 = vadd.f32 %v175_v59, %v174_v49 }
  0x50   :  { %v182_v2 = vrot.slane %v181_v48, 2  ;;  %v150_v5 = vadd.f32 %v149_v61, %v148_v52  ;;  %v157_v6 = vadd.f32 %v156_v62, %v155_v53  ;;  %v201_v8 = vmul.f32 0.0625, %v143_v60 }
  0x51   :  { %v189_v7 = vrot.slane %v188_v63, 2  ;;  %v164_v9 = vadd.f32 %v163_v0, %v162_v57  ;;  %v170_v10 = vrot.slane %v169_v1, 1  ;;  %v177_v11 = vrot.slane %v176_v54, 1 }
  0x52   :  { %v183_v12 = vadd.f32 %v182_v2, %v181_v48  ;;  %v202_v14 = vmul.f32 0.0625, %v150_v5  ;;  %v203_v55 = vmul.f32 0.0625, %v157_v6  ;;  %v243_v32 = vlaneseq }
  0x53   :  { %v190_v13 = vadd.f32 %v189_v7, %v188_v63  ;;  %v171_v15 = vadd.f32 %v170_v10, %v169_v1  ;;  %v178_v16 = vadd.f32 %v177_v11, %v176_v54  ;;  %v204_v18 = vmul.f32 0.0625, %v164_v9 }
  0x54   :  { %v184_v17 = vrot.slane %v183_v12, 1  ;;  %v283_v20 = vsel %vm269_vm0, %v202_v14, %v201_v8  ;;  %v244_v33 = vshrl.u32 %v243_v32, 7  ;;  %v392_v58 = vstv %s625_s4 }
  0x55   :  { %v191_v19 = vrot.slane %v190_v13, 1  ;;  %v205_v22 = vmul.f32 0.0625, %v171_v15  ;;  %v206_v23 = vmul.f32 0.0625, %v178_v16  ;;  %v284_v3 = vsel %vm271_vm1, %v203_v55, %v283_v20 }
  0x56   :  { %v185_v21 = vadd.f32 %v184_v17, %v183_v12  ;;  %v285_v25 = vsel %vm273_vm2, %v204_v18, %v284_v3  ;;  %v245_v34 = vsub.s32 0, %v244_v33  ;;  %v249_v36 = vsub.s32 1, %v244_v33 }
  0x57   :  { %v192_v24 = vadd.f32 %v191_v19, %v190_v13  ;;  %v286_v27 = vsel %vm275_vm3, %v205_v22, %v285_v25 }
  0x58   :  { %v207_v26 = vmul.f32 0.0625, %v185_v21  ;;  %v287_v29 = vsel %vm277_vm4, %v206_v23, %v286_v27  ;;  %v246_v38 = vrot.slane %v241_v35, %v245_v34  ;;  %v250_v4 = vrot.slane %v241_v35, %v249_v36 }
  0x59   :  { %v208_v28 = vmul.f32 0.0625, %v192_v24  ;;  %v374_v39 = vrot.slane %v369_v37, %v245_v34  ;;  %v378_v41 = vrot.slane %v369_v37, %v249_v36 }
  0x5a   :  { %v288_v30 = vsel %vm279_vm5, %v207_v26, %v287_v29 }
  0x5b   :  { %v289_v31 = vsel %vm281_vm6, %v208_v28, %v288_v30 }
  0x5c   :  { %363 = vmatmul.mubr.f32.vlgmr.msra.gmra.mrb[0].mxu1 %v289_v31 }
 0x11d   :  { %v358_v40 = vpop.f32.mrb[0].mxu0 }
 0x11e   :  { %v359_v42 = vadd.f32 %v358_v40, %v246_v38  ;;  %v360_v43 = vpop.f32.mrb[1].mxu0 }
 0x11f   :  { %v361_v44 = vadd.f32 %v360_v43, %v250_v4 }
 0x120   :  { %v381_v45 = vmul.f32 %v374_v39, %v359_v42 }
 0x121   :  { %v382_v46 = vmul.f32 %v378_v41, %v361_v44 }
 0x123   :  { %v385_v47 = vadd.f32 %v382_v46, %v381_v45 }
 0x125   :  { %386 = vadd.xlane.f32.xlu0 %v385_v47 }
 0x12f   :  { %v364_v49 = vpop.f32.mrb[0].mxu1 }
 0x130   :  { %v365_v50 = vadd.f32 %v364_v49, %v246_v38  ;;  %v366_v51 = vpop.f32.mrb[1].mxu1 }
 0x131   :  { %v367_v52 = vadd.f32 %v366_v51, %v250_v4 }
 0x132   :  { %v383_v53 = vmul.f32 %v374_v39, %v365_v50 }
 0x133   :  { %v384_v56 = vmul.f32 %v378_v41, %v367_v52 }
 0x135   :  { %v388_v57 = vadd.f32 %v384_v56, %v383_v53 }
 0x137   :  { %389 = vadd.xlane.f32.xlu0 %v388_v57 }
 0x1b2   :  { %v387_v59 = vpop.xlane.xlu0 %386 }
 0x1b3   :  { %v393_v48 = vadd.f32 %v392_v58, %v387_v59 }
 0x1b5   :  { %396 = vst.msk [vmem:[%s626_s5] sm:$0xff] %vm395_vm7, %v393_v48 }
 0x1c4   :  { %v390_v60 = vpop.xlane.xlu0 %389 }
 0x1c5   :  { %v394_v61 = vadd.f32 %v392_v58, %v390_v60 }
 0x1c7   :  { %397 = vst.msk [vmem:[%s626_s5 + $0x8] sm:$0xff] %vm395_vm7, %v394_v61 }
 0x1c8   :  { %402 = vsyncpa [#allocation4], 1 }
 0x1c9   :  { %403 = vsyncpa [#allocation6], 1 }

</bundles_post_ra>
